<compile_context>
chip_gen: v7x
topology: tpu7x:2x2x1
jax: 0.10.0
libtpu: 0.0.40
codegen_flags: <defaults>
</compile_context>

<pallas_src>
import jax
import jax.numpy as jnp
from jax.experimental import pallas as pl
from jax.experimental.pallas import tpu as pltpu

TEMPERATURE = 0.5
_NEG_BIG = -1e30       # logit for padded vocab columns; exp() underflows to 0 in f32
_LANE = 128
_SUBLANE = 8
_FUSED_VMEM_BUDGET = 40 * 1024 * 1024   # keep fused path comfortably under v7x's 64 MiB


def _round_up(x, m):
    return (x + m - 1) // m * m


def _block_bytes(shape, dtype):
    n = 1
    for s in shape:
        n *= int(s)
    return n * jnp.dtype(dtype).itemsize


def _pick_tile_b(batch, requested):
    # Fixed batch tile, multiple of 8.  Cap at ~batch/2 so the grid has at
    # least two steps when possible (keeps both v7x TensorCores busy and gives
    # the pipeline something to overlap).  Sweep 128/256/512 at prod shapes.
    if batch <= _SUBLANE:
        return batch
    cap = _round_up((batch + 1) // 2, _SUBLANE)
    tb = min(requested, cap)
    return max(_SUBLANE, (tb // _SUBLANE) * _SUBLANE)


# --------------------------------------------------------------------------
# parameter preparation (offline, one-time)
# --------------------------------------------------------------------------
def prepare_params(w, b, *, temperature=TEMPERATURE, matmul_dtype=None):
    """Fold 1/temperature into W and b, pad hidden to a lane-dense multiple of
    128 (pad cols: weight 0, bias -1e30), optionally cast W to bf16 for the MXU.

    w: (input_size, hidden)   [transpose of PyTorch nn.Linear.weight]
    b: (hidden,)
    returns (w_p: (input_size, hidden_p), b_p: (1, hidden_p) f32)
    """
    _, hidden = w.shape
    inv_t = jnp.float32(1.0 / temperature)
    w = w.astype(jnp.float32) * inv_t
    b = b.astype(jnp.float32) * inv_t
    hidden_p = _round_up(hidden, _LANE)
    pad = hidden_p - hidden
    if pad:
        w = jnp.pad(w, ((0, 0), (0, pad)))
        b = jnp.pad(b, (0, pad), constant_values=_NEG_BIG)
    if matmul_dtype is not None:
        w = w.astype(matmul_dtype)        # bias stays f32 (added post-MXU)
    return w, b.reshape(1, hidden_p)


# --------------------------------------------------------------------------
# kernels
# --------------------------------------------------------------------------
def _fused_kernel(x_ref, w_ref, b_ref, o_ref):
    # logits = x @ W + b   (1/temperature already folded into W and b)
    logits = jnp.dot(x_ref[...], w_ref[...],
                     preferred_element_type=jnp.float32) + b_ref[...]
    # numerically stable log-softmax over the (lane) feature axis
    m = jnp.max(logits, axis=-1, keepdims=True)
    shifted = logits - m
    lse = jnp.log(jnp.sum(jnp.exp(shifted), axis=-1, keepdims=True))
    o_ref[...] = (shifted - lse).astype(o_ref.dtype)


def _logits_lse_kernel(x_ref, w_ref, b_ref, logits_ref, lse_ref, m_sc, l_sc):
    # hidden-tiled pass: write raw logits block, maintain online logsumexp
    j = pl.program_id(1)

    @pl.when(j == 0)
    def _():
        m_sc[...] = jnp.full(m_sc.shape, -jnp.inf, m_sc.dtype)
        l_sc[...] = jnp.zeros(l_sc.shape, l_sc.dtype)

    logits = jnp.dot(x_ref[...], w_ref[...],
                     preferred_element_type=jnp.float32) + b_ref[...]
    logits_ref[...] = logits

    m_prev = m_sc[...]
    m_new = jnp.maximum(m_prev, jnp.max(logits, axis=-1, keepdims=True))
    l_sc[...] = (l_sc[...] * jnp.exp(m_prev - m_new)
                 + jnp.sum(jnp.exp(logits - m_new), axis=-1, keepdims=True))
    m_sc[...] = m_new

    @pl.when(j == pl.num_programs(1) - 1)
    def _():
        lse_ref[...] = m_sc[...] + jnp.log(l_sc[...])


def _normalize_kernel(logits_ref, lse_ref, o_ref):
    o_ref[...] = (logits_ref[...] - lse_ref[...]).astype(o_ref.dtype)


# --------------------------------------------------------------------------
# wrapper
# --------------------------------------------------------------------------
def generator_forward(x, w_p, b_p, hidden, *, tile_b=128, tile_h=512,
                      out_dtype=None, path="auto"):
    """Generator forward: log_softmax((x @ W + b) / temperature).

    x      : (B, input_size)
    w_p    : (input_size, hidden_p)  from prepare_params (temp-folded, padded)
    b_p    : (1, hidden_p) f32       from prepare_params
    hidden : un-padded output width; result is (B, hidden)
    """
    orig_dtype = x.dtype
    out_dtype = out_dtype or orig_dtype
    batch, in_sz = x.shape
    hidden_p = w_p.shape[1]

    if x.dtype != w_p.dtype:
        x = x.astype(w_p.dtype)          # e.g. bf16 matmul inputs on v6e/v7x

    # fixed batch tile + padded batch so every block is full-sized
    tb = _pick_tile_b(batch, tile_b)
    bp = _round_up(batch, tb)
    if bp != batch:
        x = jnp.pad(x, ((0, bp - batch), (0, 0)))
    nb = bp // tb

    fused_est = (2 * _block_bytes((tb, in_sz), x.dtype)
                 + 2 * _block_bytes((in_sz, hidden_p), w_p.dtype)
                 + 2 * _block_bytes((1, hidden_p), b_p.dtype)
                 + 2 * _block_bytes((tb, hidden_p), out_dtype)
                 + 3 * _block_bytes((tb, hidden_p), jnp.float32))  # f32 temps

    if path == "auto":
        path = "fused" if fused_est <= _FUSED_VMEM_BUDGET else "tiled"

    if path == "fused":
        vmem_limit = int(min(max(fused_est + (8 << 20), 32 << 20), 64 << 20))
        out_p = pl.pallas_call(
            _fused_kernel,
            out_shape=jax.ShapeDtypeStruct((bp, hidden_p), out_dtype),
            grid_spec=pltpu.PrefetchScalarGridSpec(
                num_scalar_prefetch=0,
                grid=(nb,),
                in_specs=[
                    pl.BlockSpec((tb, in_sz), lambda i: (i, 0)),
                    pl.BlockSpec((in_sz, hidden_p), lambda i: (0, 0)),
                    pl.BlockSpec((1, hidden_p), lambda i: (0, 0)),
                ],
                out_specs=pl.BlockSpec((tb, hidden_p), lambda i: (i, 0)),
            ),
            compiler_params=pltpu.CompilerParams(
                dimension_semantics=("parallel",),
                vmem_limit_bytes=vmem_limit,
            ),
        )(x, w_p, b_p)
        return out_p[:batch, :hidden]

    # ---------------- hidden-tiled online-logsumexp path ----------------
    th = min(_round_up(tile_h, _LANE), hidden_p)
    hidden_pp = _round_up(hidden_p, th)
    if hidden_pp != hidden_p:
        w_p = jnp.pad(w_p, ((0, 0), (0, hidden_pp - hidden_p)))
        b_p = jnp.pad(b_p, ((0, 0), (0, hidden_pp - hidden_p)),
                      constant_values=_NEG_BIG)
    nh = hidden_pp // th

    tiled_est = (2 * _block_bytes((tb, in_sz), x.dtype)
                 + 2 * _block_bytes((in_sz, th), w_p.dtype)
                 + 2 * _block_bytes((1, th), b_p.dtype)
                 + 2 * _block_bytes((tb, th), jnp.float32)   # logits block
                 + 3 * _block_bytes((tb, th), jnp.float32)   # f32 temps
                 + 8 * _block_bytes((tb, 1), jnp.float32))   # lse + m/l scratch
    vmem_limit = int(min(max(tiled_est + (8 << 20), 32 << 20), 64 << 20))

    # Pass 1: logits blocks + per-row logsumexp (reduction axis last, arbitrary).
    # (If weight DMA shows up exposed, pipeline_mode=pl.Buffered(3) on the
    #  weight spec is the next knob to try.)
    logits, lse = pl.pallas_call(
        _logits_lse_kernel,
        out_shape=(jax.ShapeDtypeStruct((bp, hidden_pp), jnp.float32),
                   jax.ShapeDtypeStruct((bp, 1), jnp.float32)),
        grid_spec=pltpu.PrefetchScalarGridSpec(
            num_scalar_prefetch=0,
            grid=(nb, nh),
            in_specs=[
                pl.BlockSpec((tb, in_sz), lambda i, j: (i, 0)),
                pl.BlockSpec((in_sz, th), lambda i, j: (0, j)),
                pl.BlockSpec((1, th), lambda i, j: (0, j)),
            ],
            out_specs=[
                pl.BlockSpec((tb, th), lambda i, j: (i, j)),
                pl.BlockSpec((tb, 1), lambda i, j: (i, 0)),
            ],
            scratch_shapes=[pltpu.VMEM((tb, 1), jnp.float32),
                            pltpu.VMEM((tb, 1), jnp.float32)],
        ),
        compiler_params=pltpu.CompilerParams(
            dimension_semantics=("parallel", "arbitrary"),
            vmem_limit_bytes=vmem_limit,
        ),
    )(x, w_p, b_p)

    # Pass 2: out = logits - lse (cheap elementwise, both axes parallel).
    out_p = pl.pallas_call(
        _normalize_kernel,
        out_shape=jax.ShapeDtypeStruct((bp, hidden_pp), out_dtype),
        grid_spec=pltpu.PrefetchScalarGridSpec(
            num_scalar_prefetch=0,
            grid=(nb, nh),
            in_specs=[
                pl.BlockSpec((tb, th), lambda i, j: (i, j)),
                pl.BlockSpec((tb, 1), lambda i, j: (i, 0)),
            ],
            out_specs=pl.BlockSpec((tb, th), lambda i, j: (i, j)),
        ),
        compiler_params=pltpu.CompilerParams(
            dimension_semantics=("parallel", "parallel"),
            vmem_limit_bytes=vmem_limit,
        ),
    )(logits, lse)
    return out_p[:batch, :hidden]


def reference_forward(x, w, b, temperature=TEMPERATURE):
    logits = (x @ w + b) / temperature
    return jax.nn.log_softmax(logits, axis=-1)


if __name__ == "__main__":
    key = jax.random.PRNGKey(0)
    k_x, k_w, k_b = jax.random.split(key, 3)

    batch, input_size, hidden_size = 16, 32, 200   # hidden not a multiple of 128 on purpose

    # PyTorch Linear-style init, stored as (input_size, hidden) = weight.T
    bound = 1.0 / jnp.sqrt(jnp.float32(input_size))
    w = jax.random.uniform(k_w, (input_size, hidden_size), jnp.float32, -bound, bound)
    b = jax.random.uniform(k_b, (hidden_size,), jnp.float32, -bound, bound)
    x = jax.random.normal(k_x, (batch, input_size), jnp.float32)

    ref = reference_forward(x, w, b)

    # 1) fused path (weight fully resident), f32 matmul
    w_p, b_p = prepare_params(w, b)
    out = jax.block_until_ready(generator_forward(x, w_p, b_p, hidden_size, path="fused"))
    assert out.shape == (batch, hidden_size)
    assert jnp.allclose(out, ref, atol=1e-5, rtol=1e-5), "fused path mismatch"

    # 2) hidden-tiled online-logsumexp path (what vocab-sized hidden would use)
    out_t = jax.block_until_ready(
        generator_forward(x, w_p, b_p, hidden_size, path="tiled", tile_h=128))
    assert out_t.shape == (batch, hidden_size)
    assert jnp.allclose(out_t, ref, atol=1e-5, rtol=1e-5), "tiled path mismatch"

    # 3) bf16 matmul inputs (f32 accumulation + f32 softmax), looser tolerance
    w_bp, b_bp = prepare_params(w, b, matmul_dtype=jnp.bfloat16)
    out_bf = jax.block_until_ready(generator_forward(x, w_bp, b_bp, hidden_size))
    assert jnp.allclose(out_bf, ref, atol=5e-2, rtol=5e-2), "bf16 path mismatch"

    print("KERNEL_OK")
</pallas_src>

<mosaic_0001>
module attributes {stable_mosaic.version = 11 : i64} {
  func.func @_fused_kernel(%arg0: i32, %arg1: memref<8x32xf32, #tpu.memory_space<vmem>>, %arg2: memref<32x256xf32, #tpu.memory_space<vmem>>, %arg3: memref<1x256xf32, #tpu.memory_space<vmem>>, %arg4: memref<8x256xf32, #tpu.memory_space<vmem>>) attributes {dimension_semantics = [#tpu.dimension_semantics<parallel>], iteration_bounds = array<i64: 2>, scalar_prefetch = 0 : i64, scratch_operands = 0 : i64, tpu.core_type = #tpu.core_type<tc>, window_params = [{transform_indices = @transform_0, window_bounds = array<i64: 8, 32>}, {pipeline_mode = #tpu.pipeline_mode<synchronous>, transform_indices = @transform_1, window_bounds = array<i64: 32, 256>}, {pipeline_mode = #tpu.pipeline_mode<synchronous>, transform_indices = @transform_2, window_bounds = array<i64: 1, 256>}, {transform_indices = @transform_3, window_bounds = array<i64: 8, 256>}]} {
    %c0 = arith.constant 0 : index
    %c0_0 = arith.constant 0 : index
    %0 = vector.load %arg1[%c0, %c0_0] : memref<8x32xf32, #tpu.memory_space<vmem>>, vector<8x32xf32>
    %c0_1 = arith.constant 0 : index
    %c0_2 = arith.constant 0 : index
    %1 = vector.load %arg2[%c0_1, %c0_2] : memref<32x256xf32, #tpu.memory_space<vmem>>, vector<32x256xf32>
    %cst = arith.constant dense<0.000000e+00> : vector<8x256xf32>
    %2 = tpu.matmul %0, %1, %cst {dimension_numbers = #tpu.dot_dimension_numbers<[1], [0], [0], [1], [0, 0, 1, 1], [], []>} : vector<8x32xf32>, vector<32x256xf32>, vector<8x256xf32> -> vector<8x256xf32>
    %c0_3 = arith.constant 0 : index
    %c0_4 = arith.constant 0 : index
    %3 = vector.load %arg3[%c0_3, %c0_4] : memref<1x256xf32, #tpu.memory_space<vmem>>, vector<1x256xf32>
    %4 = vector.broadcast %3 : vector<1x256xf32> to vector<8x256xf32>
    %5 = arith.addf %2, %4 : vector<8x256xf32>
    %cst_5 = arith.constant dense<0xFF800000> : vector<8xf32>
    %6 = vector.multi_reduction <maximumf>, %5, %cst_5 [1] : vector<8x256xf32> to vector<8xf32>
    %7 = vector.shape_cast %6 : vector<8xf32> to vector<8x1xf32>
    %8 = vector.broadcast %7 : vector<8x1xf32> to vector<8x256xf32>
    %9 = arith.subf %5, %8 : vector<8x256xf32>
    %10 = math.exp %9 : vector<8x256xf32>
    %cst_6 = arith.constant dense<0.000000e+00> : vector<8xf32>
    %11 = vector.multi_reduction <add>, %10, %cst_6 [1] : vector<8x256xf32> to vector<8xf32>
    %12 = vector.shape_cast %11 : vector<8xf32> to vector<8x1xf32>
    %13 = math.log %12 : vector<8x1xf32>
    %14 = vector.broadcast %13 : vector<8x1xf32> to vector<8x256xf32>
    %15 = arith.subf %9, %14 : vector<8x256xf32>
    %c0_7 = arith.constant 0 : index
    %c0_8 = arith.constant 0 : index
    %16 = vector.load %arg4[%c0_7, %c0_8] : memref<8x256xf32, #tpu.memory_space<vmem>>, vector<8x256xf32>
    tpu.vector_store %arg4[%c0_7, %c0_8], %15 {strides = array<i32>} : memref<8x256xf32, #tpu.memory_space<vmem>>, vector<8x256xf32>,
    return
  }
  func.func @transform_0(%arg0: i32) -> (i32, i32) {
    %c0_i32 = arith.constant 0 : i32
    %c0_i32_0 = arith.constant 0 : i32
    return %arg0, %c0_i32 : i32, i32
  }
  func.func @transform_1(%arg0: i32) -> (i32, i32) {
    %c0_i32 = arith.constant 0 : i32
    %c0_i32_0 = arith.constant 0 : i32
    %c0_i32_1 = arith.constant 0 : i32
    return %c0_i32, %c0_i32_0 : i32, i32
  }
  func.func @transform_2(%arg0: i32) -> (i32, i32) {
    %c0_i32 = arith.constant 0 : i32
    %c0_i32_0 = arith.constant 0 : i32
    %c0_i32_1 = arith.constant 0 : i32
    return %c0_i32, %c0_i32_0 : i32, i32
  }
  func.func @transform_3(%arg0: i32) -> (i32, i32) {
    %c0_i32 = arith.constant 0 : i32
    %c0_i32_0 = arith.constant 0 : i32
    return %arg0, %c0_i32 : i32, i32
  }
}

</mosaic_0001>

<bundles_post_ra>
// kernel: tpu_custom_call.1
= control target key start
LH: loop header
LB: loop body
LE: loop exit
PB: predicated region body
PF: predicated region fallthrough
CT: control target
= control target key end

     0   :  { %8 = vsyncpa [#allocation3], 0  ;;  %s857_s0 = inlined_call_operand.hbm [shape: f32[16,32], index: 0, kind: input, shape index: {}]   ;;  %s858_s1 = inlined_call_operand.hbm [shape: f32[32,256], index: 1, kind: input, shape index: {}]   ;;  %s859_s2 = inlined_call_operand.vmem [shape: f32[1,256], index: 2, kind: input, shape index: {}]   ;;  %s860_s3 = inlined_call_operand.hbm [shape: f32[16,256], index: 3, kind: output, shape index: {}]  }
   0x1   :  { %10 = vsyncpa [#allocation3 + $0x1], 0 }
   0x2   :  { %11 = vsyncpa [#allocation6], 0 }
   0x3   :  { %12 = vsyncpa [#allocation4], 0 }
   0x4   :  { %14 = vsyncpa [#allocation4 + $0x1], 0  ;;  %s657_s12 = smov 0   ;;  %s659_s13 = smov 0  }
   0x5   :  { %s661_s14 = smov 0   ;;  %s663_s15 = smov 0  }
   0x6 LB: > { %s678_s16 = sadd.s32 4294967295, %s629_s15   ;;  %s410_s17 = sadd.s32 4294967294, %s629_s15   ;;  %s629_s15 = sphi %s663_s15, %s880_s15   ;;  %s625_s14 = sphi %s661_s14, %s879_s14   ;;  %s621_s13 = sphi %s659_s13, %s878_s13   ;;  %s617_s12 = sphi %s657_s12, %s877_s12  }
   0x7   : > { %p40_p0 = scmp.ne.s32.totalorder %s621_s13, %s617_s12  ;;  %p861_p1 = scmp.eq.s32.totalorder %s678_s16, 0 }
   0x8   : > { %p112_p3 = scmp.eq.s32.totalorder %s410_s17, 1  ;;  %p411_p5 = scmp.ge.s32.totalorder %s629_s15, 1 }
   0x9   : > { %p687_p4 = por %p861_p1, %p40_p0  ;;  %p119_p7 = scmp.lt.s32.totalorder %s629_s15, 3 }
   0xa   : > { %p692_p6 = por %p112_p3, %p40_p0  ;;  %s631_s21 = smov [#allocation5]  }
   0xb   : > { %s864_s18 = scalar_select %p687_p4, 1, 0 }
   0xc   : > { %s865_s19 = scalar_select %p692_p6, 1, 0 }
   0xd   : > { %p697_p8 = pnand %p411_p5, %p119_p7  ;;  %s131_s22 = sshll.u32 %s631_s21, 4  ;;  %s701_s22 = int_to_ptr.vmem [resolvable:$true] %s131_s22 }
   0xe   : > { %s713_s24 = sadd.s32 1, %s629_s15   ;;  %s27_s25 = sadd.s32 1, %s625_s14 }
   0xf   : > { %s866_s20 = scalar_select %p697_p8, 1, 0 }
  0x10   : > { %p443_p9 = pneg %p697_p8  ;;  %s24_s26 = ssub.s32 %s629_s15, %s713_s24 }
  0x11   : > { %s501_s29 = scalar_lea.hbm %s858_s1, 1024 }
  0x12   : > { %p708_p11 = pnand %p443_p9, %p861_p1  ;;  %p502_p12 = scmp.ne.s32.totalorder %s858_s1, %s501_s29 }
  0x13   : > { %p508_p5 = scmp.lt.u32.totalorder %s501_s29, %s858_s1 }
  0x14   : > { %p503_p13 = pneg %p708_p11 }
  0x16   : > { %p504_p0 = pnand %p503_p13, %p502_p12 }
  0x18   : > { %p505_p3 = pneg %p504_p0 }
  0x1a   : > { %p510_p7 = pnand %p508_p5, %p505_p3 }
  0x1c   : > { %513 = shalt.err (!%p510_p7)
}
  0x1d   : > { %s514_s7 = scalar_lea.vmem %s701_s22, 1024  ;;  %p522_p2 = scmp.lt.s32.totalorder %s701_s22, %s701_s22 }
  0x1e   : > { %p515_p9 = scmp.ne.s32.totalorder %s701_s22, %s514_s7  ;;  %p523_p6 = scmp.lt.s32.totalorder %s514_s7, %s514_s7 }
  0x20   : > { %p517_p10 = pnand %p515_p9, %p503_p13  ;;  %p524_p4 = por %p523_p6, %p522_p2 }
  0x22   : > { %p518_p1 = pneg %p517_p10 }
  0x24   : > { %p525_p8 = pnand %p524_p4, %p518_p1 }
  0x26   : > { %528 = shalt.err (!%p525_p8)
}
  0x27   : > { %s632_s8 = smov 256   ;;  %s633_s9 = smov 16  }
  0x28   : > { %446 = dma.hbm_to_vmem [thread:$0]  (!%p708_p11), %s858_s1, 1024, %s701_s22, [#allocation6], %s632_s8, %s632_s8, %s633_s9  }
  0x29   : > { %p25_p2 = scmp.eq.s32.totalorder %s24_s26, 0  ;;  %p34_p1 = scmp.ne.s32.totalorder %s625_s14, %s621_s13 }
  0x2a   : > { %p35_p4 = scmp.eq.s32.totalorder %s629_s15, 0  ;;  %p456_p6 = scmp.lt.s32.totalorder %s629_s15, 2 }
  0x2b   : > { %s744_s17 = scalar_select %p25_p2, %s625_s14, %s27_s25  }
  0x2c   : > { %p36_p8 = por %p35_p4, %p34_p1  ;;  %p868_p10 = scmp.eq.s32.totalorder %s678_s16, 1 }
  0x2d   : > { %s148_s27 = sand.u32 1, %s625_s14   ;;  %s415_s28 = sshll.u32 %s629_s15, 7 }
  0x2e   : > { %p748_p12 = por %p868_p10, %p34_p1  ;;  %s414_s29 = sshll.u32 %s148_s27, 3 }
  0x2f   : > { %s757_s4 = scalar_lea.hbm %s857_s0, %s415_s28  ;;  %s152_s22 = scalar_lea.vmem [#allocation2], %s414_s29 }
  0x30   : > { %s159_s25 = sshll.u32 %s152_s22, 4  ;;  %p759_p11 = pnand %p456_p6, %p36_p8  ;;  %s763_s25 = int_to_ptr.vmem [resolvable:$true] %s159_s25 }
  0x31   : > { %s149_s5 = scalar_lea.sflag [#allocation3], %s148_s27  ;;  %s529_s6 = scalar_lea.hbm %s757_s4, 128 }
  0x32   : > { %p530_p13 = scmp.ne.s32.totalorder %s757_s4, %s529_s6  ;;  %p531_p0 = pneg %p759_p11 }
  0x33   : > { %s534_s9 = scalar_lea.hbm %s857_s0, 256  ;;  %p535_p7 = scmp.lt.u32.totalorder %s757_s4, %s857_s0 }
  0x34   : > { %p532_p3 = pnand %p531_p0, %p530_p13  ;;  %p536_p9 = scmp.lt.u32.totalorder %s534_s9, %s529_s6 }
  0x35   : > { %p538_p1 = scmp.lt.u32.totalorder %s529_s6, %s757_s4 }
  0x36   : > { %p533_p5 = pneg %p532_p3  ;;  %p537_p2 = por %p536_p9, %p535_p7 }
  0x38   : > { %p539_p4 = por %p538_p1, %p537_p2 }
  0x3a   : > { %p540_p6 = pnand %p539_p4, %p533_p5 }
  0x3c   : > { %543 = shalt.err (!%p540_p6)
}
  0x3d   : > { %s544_s27 = scalar_lea.vmem %s763_s25, 128  ;;  %s634_s28 = smov [#allocation2]  }
  0x3e   : > { %p545_p8 = scmp.ne.s32.totalorder %s763_s25, %s544_s27  ;;  %s549_s29 = sshll.u32 %s634_s28, 4  ;;  %s550_s29 = int_to_ptr.vmem [resolvable:$false] %s549_s29 }
  0x3f   : > { %s551_s23 = scalar_lea.vmem %s550_s29, 256  ;;  %p552_p3 = scmp.lt.s32.totalorder %s763_s25, %s550_s29 }
  0x40   : > { %p547_p10 = pnand %p545_p8, %p531_p0  ;;  %p553_p7 = scmp.lt.s32.totalorder %s551_s23, %s544_s27 }
  0x42   : > { %p548_p13 = pneg %p547_p10  ;;  %p554_p9 = por %p553_p7, %p552_p3 }
  0x44   : > { %p555_p2 = pnand %p554_p9, %p548_p13 }
  0x46   : > { %558 = shalt.err (!%p555_p2)
}
  0x47   : > { %450 = dma.hbm_to_vmem [thread:$0]  (!%p759_p11), %s757_s4, 128, %s763_s25, %s149_s5  }
  0x48   : > { %p871_p5 = scmp.ne.s32.totalorder %s866_s20, 0 }
  0x49   : > { %s793_s30 = sand.u32 (!%p871_p5), 1, %s621_s13   ;;  %p872_p0 = scmp.ne.s32.totalorder (!%p871_p5), %s864_s18, 0 }
  0x4a   : > { %168 = sbr.rel (%p871_p5) target bundleno = 644 (0x284), region = 32  ;;  %s417_s22 = sshll.u32 (!%p871_p5), %s793_s30, 3 }
  0x4b   : > { %s171_s6 = scalar_lea.sflag (!%p871_p5), [#allocation3], %s793_s30  ;;  %s174_s7 = scalar_lea.vmem (!%p871_p5), [#allocation2], %s417_s22 }
  0x51   : > { %604 = dma.done.wait (%p872_p0), %s171_s6, 128  }
  0x52   : > { %606 = vsyncadd (%p872_p0), %s171_s6, 4294967168  ;;  %p873_p1 = scmp.eq.s32.totalorder %s678_s16, 0 }
  0x54   : > { %608 = dma.done.wait (%p873_p1), [#allocation6], 1024   ;;  %p874_p11 = pmov %p873_p1 }
  0x55   : > { %v635_v0 = vmov 0.0   ;;  %v203_v1 = vld [vmem:[#allocation5 + $0x8] sm:$0xff]  ;;  %v205_v2 = vld [vmem:[#allocation5 + $0x18] sm:$0xff]  ;;  %v202_v3 = vld [vmem:[#allocation5] sm:$0xff]  ;;  %vm222_vm0 = vcmask 261120   ;;  %v212_v14 = vlaneseq  ;;  %s419_s4 = sshll.u32 %s793_s30, 4 }
  0x56   : > { %610 = vsyncadd (%p874_p11), [#allocation6], 4294966272  ;;  %290 = vmatprep.mubr.f32.mxu0 %v635_v0  ;;  %v427_v4 = vpack.c.bf16 %v205_v2, %v203_v1  ;;  %v204_v5 = vld [vmem:[#allocation5 + $0x10] sm:$0xff]  ;;  %v207_v6 = vld [vmem:[#allocation5 + $0x28] sm:$0xff]  ;;  %s426_s25 = sshll.u32 %s678_s16, 8  ;;  %s200_s26 = scalar_lea.vmem [#allocation7], %s419_s4 }
  0x57   : > { %v209_v7 = vld [vmem:[#allocation5 + $0x38] sm:$0xff]  ;;  %v429_v8 = vpack.c.bf16 %v204_v5, %v202_v3  ;;  %v206_v10 = vld [vmem:[#allocation5 + $0x20] sm:$0xff]  ;;  %v208_v11 = vld [vmem:[#allocation5 + $0x30] sm:$0xff]  ;;  %v213_v15 = vshrl.u32 %v212_v14, 7  ;;  %s330_s5 = sshll.u32 %s200_s26, 4  ;;  %s813_s10 = scalar_lea.hbm %s860_s3, %s426_s25  ;;  %s815_s5 = int_to_ptr.vmem [resolvable:$true] %s330_s5 }
  0x58   : > { %v431_v9 = vpack.c.bf16 %v209_v7, %v207_v6  ;;  %428 = vmatprep.subr.bf16.mxu0 %v427_v4  ;;  %v433_v12 = vpack.c.bf16 %v208_v11, %v206_v10  ;;  %v201_v13 = vld [vmem:[%s174_s7] sm:$0xff]  ;;  %s316_s11 = scalar_lea.sflag [#allocation4], %s793_s30  ;;  %s559_s27 = scalar_lea.vmem %s815_s5, 256 }
  0x59   : > { %430 = vmatpush1.bf16.msra.mxu0 %v429_v8  ;;  %v214_v16 = vsub.s32 0, %v213_v15  ;;  %v210_v17 = vld [vmem:[%s859_s2] sm:$0x3]  ;;  %v218_v18 = vsub.s32 1, %v213_v15  ;;  %p560_p4 = scmp.ne.s32.totalorder %s815_s5, %s559_s27  ;;  %s636_s16 = smov [#allocation7]  }
  0x5a   : > { %432 = vmatprep.subr.bf16.mxu0 %v431_v9  ;;  %s563_s28 = sshll.u32 %s636_s16, 4  ;;  %s564_s28 = int_to_ptr.vmem [resolvable:$false] %s563_s28 }
  0x5b   : > { %v215_v19 = vrot.slane %v210_v17, %v214_v16  ;;  %v219_v20 = vrot.slane %v210_v17, %v218_v18  ;;  %p561_p6 = pnand %p560_p4, %p748_p12  ;;  %s565_s29 = scalar_lea.vmem %s564_s28, 512 }
  0x5c   : > { %p566_p10 = scmp.lt.s32.totalorder %s815_s5, %s564_s28  ;;  %p567_p13 = scmp.lt.s32.totalorder %s565_s29, %s559_s27 }
  0x5d   : > { %434 = vmatpush1.bf16.msra.mxu0 %v433_v12  ;;  %p562_p8 = pneg %p561_p6 }
  0x5e   : > { %p568_p3 = por %p567_p13, %p566_p10 }
  0x60   : > { %420 = vmatmul.mubr.msk.f32.vlgmr.msra.gmra.mrb[0].mxu0 %vm222_vm0, %v201_v13  ;;  %p569_p7 = pnand %p568_p3, %p562_p8 }
 0x133   : > { %v292_v21 = vpop.f32.mrb[0].mxu0 }
 0x134   : > { %v293_v22 = vadd.f32 %v292_v21, %v215_v19  ;;  %v294_v23 = vpop.f32.mrb[1].mxu0 }
 0x135   : > { %v295_v24 = vadd.f32 %v294_v23, %v219_v20 }
 0x137   : > { %v297_v25 = vmax.f32 %v293_v22, %v295_v24 }
 0x139   : > { %298 = vmax.xlane.f32.xlu0 %v297_v25 }
 0x1c6   : > { %v299_v26 = vpop.xlane.xlu0 %298 }
 0x1c7   : > { %v300_v27 = vsub.f32 %v293_v22, %v299_v26  ;;  %v301_v28 = vsub.f32 %v295_v24, %v299_v26 }
 0x1c9   : > { %v302_v29 = vmul.f32 1.442695, %v300_v27  ;;  %v304_v30 = vmul.f32 1.442695, %v301_v28 }
 0x1cb   : > { %495 = vpow2.f32 %v302_v29 }
 0x1cc   : > { %497 = vpow2.f32 %v304_v30 }
 0x1d5   : > { %v496_v31 = vpop.eup %495 }
 0x1d6   : > { %v498_v32 = vpop.eup %497 }
 0x1d7   : > { %v306_v33 = vadd.f32 %v498_v32, %v496_v31 }
 0x1d9   : > { %307 = vadd.xlane.f32.xlu0 %v306_v33 }
 0x266   : > { %v308_v34 = vpop.xlane.xlu0 %307 }
 0x267   : > { %499 = vlog2.f32 %v308_v34 }
 0x271   : > { %v500_v35 = vpop.eup %499 }
 0x272   : > { %v310_v36 = vmul.f32 0.6931472, %v500_v35 }
 0x274   : > { %v311_v37 = vsub.f32 %v300_v27, %v310_v36  ;;  %v312_v38 = vsub.f32 %v301_v28, %v310_v36 }
 0x276   : > { %313 = vst [vmem:[%s200_s26] sm:$0xff] %v311_v37  ;;  %314 = vst [vmem:[%s200_s26 + $0x8] sm:$0xff] %v312_v38 }
 0x277   : > { %572 = shalt.err (!%p569_p7)
}
 0x278   : > { %s573_s23 = scalar_lea.hbm %s813_s10, 256  ;;  %s577_s6 = scalar_lea.hbm %s860_s3, 512 }
 0x279   : > { %p574_p9 = scmp.ne.s32.totalorder %s813_s10, %s573_s23  ;;  %p578_p0 = scmp.lt.u32.totalorder %s813_s10, %s860_s3 }
 0x27a   : > { %p579_p1 = scmp.lt.u32.totalorder %s577_s6, %s573_s23  ;;  %p581_p4 = scmp.lt.u32.totalorder %s573_s23, %s813_s10 }
 0x27b   : > { %p575_p2 = pnand %p574_p9, %p748_p12 }
 0x27c   : > { %p580_p11 = por %p579_p1, %p578_p0 }
 0x27d   : > { %p576_p5 = pneg %p575_p2 }
 0x27e   : > { %p582_p6 = por %p581_p4, %p580_p11 }
 0x280   : > { %p583_p8 = pnand %p582_p6, %p576_p5 }
 0x282   : > { %586 = shalt.err (!%p583_p8)
}
 0x283   : > { %441 = dma.vmem_to_hbm [thread:$0]  (%p748_p12), %s815_s5, 256, %s813_s10, %s316_s11  }
 0x284 PF: > { %s342_s20 = sand.u32 1, %s617_s12   ;;  %p875_p10 = scmp.ne.s32.totalorder %s865_s19, 0 }
 0x285   : > { %p876_p13 = scmp.ge.s32.totalorder %s629_s15, 2  ;;  %s343_s4 = scalar_lea.sflag [#allocation4], %s342_s20 }
 0x287   : > { %p452_p3 = pnand %p876_p13, %p875_p10 }
 0x289   : > { %612 = dma.done.wait (!%p452_p3), %s343_s4, 256  }
 0x28a   : > { %614 = vsyncadd (!%p452_p3), %s343_s4, 4294967040  ;;  %p17_p7 = scmp.ge.s32.totalorder %s713_s24, 4   ;;  %s877_s12 = smov %s621_s13 }
 0x28b   : > { %s878_s13 = smov %s625_s14  ;;  %s879_s14 = smov %s744_s17 }
 0x28c   : > { %s880_s15 = smov %s713_s24  ;;  %19 = sbr.rel (!%p17_p7) target bundleno = 6 (0x6), region = 81 }
 0x293   :  { %348 = vsyncpa [#allocation3], 1 }
 0x294   :  { %350 = vsyncpa [#allocation3 + $0x1], 1 }
 0x295   :  { %351 = vsyncpa [#allocation6], 1 }
 0x296   :  { %352 = vsyncpa [#allocation4], 1 }
 0x297   :  { %354 = vsyncpa [#allocation4 + $0x1], 1 }

</bundles_post_ra>
